<compile_context>
chip_gen: v7x
topology: tpu7x:2x2x1
jax: 0.10.0
libtpu: 0.0.40
codegen_flags: <defaults>
</compile_context>

<pallas_src>
import jax
import jax.numpy as jnp
import numpy as np
from jax.experimental import pallas as pl
from jax.experimental.pallas import tpu as pltpu

_EPS = 1e-5  # PyTorch BatchNorm1d default eps


def _round_up(n, m):
    return (n + m - 1) // m * m


# ----------------------------------------------------------------------------
# Kernel
# ----------------------------------------------------------------------------
def _cnn_kernel(x_ref,
                w1_ref, b1_ref,
                w2_ref, b2_ref,
                w3_ref, b3_ref,
                wf1_ref, bf1_ref,
                wf2_ref, bf2_ref,
                o_ref):
    x = x_ref[...]                       # (TB, F) float32, one batch tile
    feat = x.shape[1]

    # ---- layer 1: conv1 (centre tap) + folded bn1 + relu --------------------
    w1 = w1_ref[...].astype(jnp.float32)            # (F, 32)
    if feat <= 8:
        # K is tiny: broadcast FMAs on the VPU, keep the MXU slot free.
        z = x[:, 0:1] * w1[0:1, :]
        for i in range(1, feat):
            z = z + x[:, i:i + 1] * w1[i:i + 1, :]
    else:
        z = jnp.dot(x.astype(jnp.bfloat16), w1.astype(jnp.bfloat16),
                    preferred_element_type=jnp.float32)
    h = jnp.maximum(z + b1_ref[...], 0.0)

    # ---- layers 2/3/4 on the MXU (bf16 operands, f32 accumulation) ----------
    def dense_relu(h_in, w_ref, b_ref):
        z = jnp.dot(h_in.astype(jnp.bfloat16), w_ref[...],
                    preferred_element_type=jnp.float32)
        return jnp.maximum(z + b_ref[...], 0.0)

    h = dense_relu(h, w2_ref, b2_ref)    # conv2 + bn2 + relu (pool2 = identity)
    h = dense_relu(h, w3_ref, b3_ref)    # conv3 + bn3 + relu (flatten = no-op)
    h = dense_relu(h, wf1_ref, bf1_ref)  # fc1 + bn_fc1 + relu (dropout = id)

    # ---- fc2 (N = 1): VPU multiply + lane reduction, then sigmoid -----------
    z = jnp.sum(h * wf2_ref[...], axis=-1, keepdims=True) + bf2_ref[...]
    o_ref[...] = jax.nn.sigmoid(z)


# ----------------------------------------------------------------------------
# Wrapper
# ----------------------------------------------------------------------------
def cnn_forward(x, params, *, batch_tile=1024):
    B, F = x.shape
    TB = min(batch_tile, _round_up(B, 8))          # multiple of 8 (f32 sublane)
    Bp = _round_up(B, TB)
    if Bp != B:                                    # zero-pad the tail tile
        x = jnp.pad(x, ((0, Bp - B), (0, 0)))

    weights = (params["w1"], params["b1"],
               params["w2"], params["b2"],
               params["w3"], params["b3"],
               params["wf1"], params["bf1"],
               params["wf2"], params["bf2"])

    x_spec = pl.BlockSpec((TB, F), lambda i: (i, 0))
    # Full-array blocks with constant index_map: fetched once, resident in VMEM
    # across all batch tiles (total ~100 KB).
    w_specs = [pl.BlockSpec(w.shape, lambda i: (0, 0)) for w in weights]
    out_spec = pl.BlockSpec((TB, 1), lambda i: (i, 0))

    out = pl.pallas_call(
        _cnn_kernel,
        out_shape=jax.ShapeDtypeStruct((Bp, 1), jnp.float32),
        grid_spec=pltpu.PrefetchScalarGridSpec(
            num_scalar_prefetch=0,
            grid=(pl.cdiv(Bp, TB),),
            in_specs=[x_spec] + w_specs,
            out_specs=out_spec),
        compiler_params=pltpu.CompilerParams(
            dimension_semantics=("parallel",)),
    )(x, *weights)
    return out[:B]


# ----------------------------------------------------------------------------
# Parameters (PyTorch-style init) + eval-mode BN fold
# ----------------------------------------------------------------------------
def _bn_default(c):
    return dict(gamma=jnp.ones((c,), jnp.float32),
                beta=jnp.zeros((c,), jnp.float32),
                mean=jnp.zeros((c,), jnp.float32),
                var=jnp.ones((c,), jnp.float32))


def init_raw_params(features, time_steps, key):
    flat = 128 * ((time_steps + 3) // 4)
    assert flat == 128, (
        "x.unsqueeze(2) makes the conv length 1, so flatten yields 128 features; "
        "the module only runs when (time_steps + 3) // 4 == 1")

    ks = jax.random.split(key, 10)

    def uinit(k, shape, fan_in):
        bound = 1.0 / np.sqrt(fan_in)
        return jax.random.uniform(k, shape, jnp.float32, -bound, bound)

    return dict(
        w1=uinit(ks[0], (32, features, 3), features * 3),
        b1=uinit(ks[1], (32,), features * 3),
        w2=uinit(ks[2], (64, 32, 3), 32 * 3),
        b2=uinit(ks[3], (64,), 32 * 3),
        w3=uinit(ks[4], (128, 64, 3), 64 * 3),
        b3=uinit(ks[5], (128,), 64 * 3),
        wf1=uinit(ks[6], (128, flat), flat),     # nn.Linear weight is (out, in)
        bf1=uinit(ks[7], (128,), flat),
        wf2=uinit(ks[8], (1, 128), 128),
        bf2=uinit(ks[9], (1,), 128),
        bn1=_bn_default(32), bn2=_bn_default(64),
        bn3=_bn_default(128), bnf1=_bn_default(128),
    )


def fold_params_for_kernel(raw):
    """Fold eval-mode BN into weight/bias; MXU weights stored in bf16."""
    def fold(w_in_out, b, bn):
        scale = bn["gamma"] * jax.lax.rsqrt(bn["var"] + _EPS)
        return w_in_out * scale[None, :], (b - bn["mean"]) * scale + bn["beta"]

    w1, b1 = fold(jnp.transpose(raw["w1"][:, :, 1]), raw["b1"], raw["bn1"])
    w2, b2 = fold(jnp.transpose(raw["w2"][:, :, 1]), raw["b2"], raw["bn2"])
    w3, b3 = fold(jnp.transpose(raw["w3"][:, :, 1]), raw["b3"], raw["bn3"])
    wf1, bf1 = fold(jnp.transpose(raw["wf1"]), raw["bf1"], raw["bnf1"])

    return dict(
        w1=w1,                              # VPU path: keep f32
        b1=b1[None, :],
        w2=w2.astype(jnp.bfloat16), b2=b2[None, :],
        w3=w3.astype(jnp.bfloat16), b3=b3[None, :],
        wf1=wf1.astype(jnp.bfloat16), bf1=bf1[None, :],
        wf2=raw["wf2"].astype(jnp.float32),  # (1,128) row for the VPU reduce
        bf2=raw["bf2"][None, :],             # (1,1)
    )


# ----------------------------------------------------------------------------
# Pure-JAX reference (f32, explicit BN) = PyTorch eval-mode forward
# ----------------------------------------------------------------------------
def reference_forward(x, raw):
    def bn(z, p):
        return (z - p["mean"]) / jnp.sqrt(p["var"] + _EPS) * p["gamma"] + p["beta"]

    h = jnp.maximum(bn(x @ jnp.transpose(raw["w1"][:, :, 1]) + raw["b1"], raw["bn1"]), 0.0)
    h = jnp.maximum(bn(h @ jnp.transpose(raw["w2"][:, :, 1]) + raw["b2"], raw["bn2"]), 0.0)
    h = jnp.maximum(bn(h @ jnp.transpose(raw["w3"][:, :, 1]) + raw["b3"], raw["bn3"]), 0.0)
    h = jnp.maximum(bn(h @ jnp.transpose(raw["wf1"]) + raw["bf1"], raw["bnf1"]), 0.0)
    return jax.nn.sigmoid(h @ jnp.transpose(raw["wf2"]) + raw["bf2"])


if __name__ == "__main__":
    F, T = 4, 4                      # features, time_steps ; forward input is (B, F)
    key = jax.random.PRNGKey(0)
    kx, kx2, kp = jax.random.split(key, 3)

    raw = init_raw_params(F, T, kp)
    params = fold_params_for_kernel(raw)
    fwd = jax.jit(cnn_forward)

    # Small shape (single tile).
    x_small = jax.random.normal(kx, (2, F), jnp.float32)
    out_small = jax.block_until_ready(fwd(x_small, params))
    ref_small = reference_forward(x_small, raw)
    assert out_small.shape == (2, 1) and out_small.dtype == jnp.float32
    np.testing.assert_allclose(np.asarray(out_small), np.asarray(ref_small),
                               atol=2e-2, rtol=2e-2)

    # Larger batch: exercises the multi-tile grid + tail padding path.
    x_big = jax.random.normal(kx2, (2500, F), jnp.float32)
    out_big = jax.block_until_ready(fwd(x_big, params))
    ref_big = reference_forward(x_big, raw)
    assert out_big.shape == (2500, 1)
    np.testing.assert_allclose(np.asarray(out_big), np.asarray(ref_big),
                               atol=2e-2, rtol=2e-2)

    print("KERNEL_OK")
</pallas_src>

<mosaic_0001>
module attributes {stable_mosaic.version = 11 : i64} {
  func.func @_cnn_kernel(%arg0: i32, %arg1: memref<8x4xf32, #tpu.memory_space<vmem>>, %arg2: memref<4x32xf32, #tpu.memory_space<vmem>>, %arg3: memref<1x32xf32, #tpu.memory_space<vmem>>, %arg4: memref<32x64xbf16, #tpu.memory_space<vmem>>, %arg5: memref<1x64xf32, #tpu.memory_space<vmem>>, %arg6: memref<64x128xbf16, #tpu.memory_space<vmem>>, %arg7: memref<1x128xf32, #tpu.memory_space<vmem>>, %arg8: memref<128x128xbf16, #tpu.memory_space<vmem>>, %arg9: memref<1x128xf32, #tpu.memory_space<vmem>>, %arg10: memref<1x128xf32, #tpu.memory_space<vmem>>, %arg11: memref<1x1xf32, #tpu.memory_space<vmem>>, %arg12: memref<8x1xf32, #tpu.memory_space<vmem>>) attributes {dimension_semantics = [#tpu.dimension_semantics<parallel>], iteration_bounds = array<i64: 1>, scalar_prefetch = 0 : i64, scratch_operands = 0 : i64, tpu.core_type = #tpu.core_type<tc>, window_params = [{transform_indices = @transform_0, window_bounds = array<i64: 8, 4>}, {pipeline_mode = #tpu.pipeline_mode<synchronous>, transform_indices = @transform_1, window_bounds = array<i64: 4, 32>}, {pipeline_mode = #tpu.pipeline_mode<synchronous>, transform_indices = @transform_2, window_bounds = array<i64: 1, 32>}, {pipeline_mode = #tpu.pipeline_mode<synchronous>, transform_indices = @transform_3, window_bounds = array<i64: 32, 64>}, {pipeline_mode = #tpu.pipeline_mode<synchronous>, transform_indices = @transform_4, window_bounds = array<i64: 1, 64>}, {pipeline_mode = #tpu.pipeline_mode<synchronous>, transform_indices = @transform_5, window_bounds = array<i64: 64, 128>}, {pipeline_mode = #tpu.pipeline_mode<synchronous>, transform_indices = @transform_6, window_bounds = array<i64: 1, 128>}, {pipeline_mode = #tpu.pipeline_mode<synchronous>, transform_indices = @transform_7, window_bounds = array<i64: 128, 128>}, {pipeline_mode = #tpu.pipeline_mode<synchronous>, transform_indices = @transform_8, window_bounds = array<i64: 1, 128>}, {pipeline_mode = #tpu.pipeline_mode<synchronous>, transform_indices = @transform_9, window_bounds = array<i64: 1, 128>}, {pipeline_mode = #tpu.pipeline_mode<synchronous>, transform_indices = @transform_10, window_bounds = array<i64: 1, 1>}, {transform_indices = @transform_11, window_bounds = array<i64: 8, 1>}]} {
    %c0 = arith.constant 0 : index
    %c0_0 = arith.constant 0 : index
    %0 = vector.load %arg1[%c0, %c0_0] : memref<8x4xf32, #tpu.memory_space<vmem>>, vector<8x4xf32>
    %c0_1 = arith.constant 0 : index
    %c0_2 = arith.constant 0 : index
    %1 = vector.load %arg2[%c0_1, %c0_2] : memref<4x32xf32, #tpu.memory_space<vmem>>, vector<4x32xf32>
    %2 = vector.extract_strided_slice %0 {offsets = [0, 0], sizes = [8, 1], strides = [1, 1]} : vector<8x4xf32> to vector<8x1xf32>
    %3 = vector.extract_strided_slice %1 {offsets = [0, 0], sizes = [1, 32], strides = [1, 1]} : vector<4x32xf32> to vector<1x32xf32>
    %4 = vector.broadcast %2 : vector<8x1xf32> to vector<8x32xf32>
    %5 = vector.broadcast %3 : vector<1x32xf32> to vector<8x32xf32>
    %6 = arith.mulf %4, %5 : vector<8x32xf32>
    %7 = vector.extract_strided_slice %0 {offsets = [0, 1], sizes = [8, 1], strides = [1, 1]} : vector<8x4xf32> to vector<8x1xf32>
    %8 = vector.extract_strided_slice %1 {offsets = [1, 0], sizes = [1, 32], strides = [1, 1]} : vector<4x32xf32> to vector<1x32xf32>
    %9 = vector.broadcast %7 : vector<8x1xf32> to vector<8x32xf32>
    %10 = vector.broadcast %8 : vector<1x32xf32> to vector<8x32xf32>
    %11 = arith.mulf %9, %10 : vector<8x32xf32>
    %12 = arith.addf %6, %11 : vector<8x32xf32>
    %13 = vector.extract_strided_slice %0 {offsets = [0, 2], sizes = [8, 1], strides = [1, 1]} : vector<8x4xf32> to vector<8x1xf32>
    %14 = vector.extract_strided_slice %1 {offsets = [2, 0], sizes = [1, 32], strides = [1, 1]} : vector<4x32xf32> to vector<1x32xf32>
    %15 = vector.broadcast %13 : vector<8x1xf32> to vector<8x32xf32>
    %16 = vector.broadcast %14 : vector<1x32xf32> to vector<8x32xf32>
    %17 = arith.mulf %15, %16 : vector<8x32xf32>
    %18 = arith.addf %12, %17 : vector<8x32xf32>
    %19 = vector.extract_strided_slice %0 {offsets = [0, 3], sizes = [8, 1], strides = [1, 1]} : vector<8x4xf32> to vector<8x1xf32>
    %20 = vector.extract_strided_slice %1 {offsets = [3, 0], sizes = [1, 32], strides = [1, 1]} : vector<4x32xf32> to vector<1x32xf32>
    %21 = vector.broadcast %19 : vector<8x1xf32> to vector<8x32xf32>
    %22 = vector.broadcast %20 : vector<1x32xf32> to vector<8x32xf32>
    %23 = arith.mulf %21, %22 : vector<8x32xf32>
    %24 = arith.addf %18, %23 : vector<8x32xf32>
    %c0_3 = arith.constant 0 : index
    %c0_4 = arith.constant 0 : index
    %25 = vector.load %arg3[%c0_3, %c0_4] : memref<1x32xf32, #tpu.memory_space<vmem>>, vector<1x32xf32>
    %26 = vector.broadcast %25 : vector<1x32xf32> to vector<8x32xf32>
    %27 = arith.addf %24, %26 : vector<8x32xf32>
    %cst = arith.constant 0.000000e+00 : f32
    %28 = vector.broadcast %cst : f32 to vector<8x32xf32>
    %29 = arith.maximumf %27, %28 : vector<8x32xf32>
    %30 = arith.truncf %29 : vector<8x32xf32> to vector<8x32xbf16>
    %c0_5 = arith.constant 0 : index
    %c0_6 = arith.constant 0 : index
    %31 = vector.load %arg4[%c0_5, %c0_6] : memref<32x64xbf16, #tpu.memory_space<vmem>>, vector<32x64xbf16>
    %cst_7 = arith.constant dense<0.000000e+00> : vector<8x64xf32>
    %32 = tpu.matmul %30, %31, %cst_7 {dimension_numbers = #tpu.dot_dimension_numbers<[1], [0], [0], [1], [0, 0, 1, 1], [], []>} : vector<8x32xbf16>, vector<32x64xbf16>, vector<8x64xf32> -> vector<8x64xf32>
    %c0_8 = arith.constant 0 : index
    %c0_9 = arith.constant 0 : index
    %33 = vector.load %arg5[%c0_8, %c0_9] : memref<1x64xf32, #tpu.memory_space<vmem>>, vector<1x64xf32>
    %34 = vector.broadcast %33 : vector<1x64xf32> to vector<8x64xf32>
    %35 = arith.addf %32, %34 : vector<8x64xf32>
    %cst_10 = arith.constant 0.000000e+00 : f32
    %36 = vector.broadcast %cst_10 : f32 to vector<8x64xf32>
    %37 = arith.maximumf %35, %36 : vector<8x64xf32>
    %38 = arith.truncf %37 : vector<8x64xf32> to vector<8x64xbf16>
    %c0_11 = arith.constant 0 : index
    %c0_12 = arith.constant 0 : index
    %39 = vector.load %arg6[%c0_11, %c0_12] : memref<64x128xbf16, #tpu.memory_space<vmem>>, vector<64x128xbf16>
    %cst_13 = arith.constant dense<0.000000e+00> : vector<8x128xf32>
    %40 = tpu.matmul %38, %39, %cst_13 {dimension_numbers = #tpu.dot_dimension_numbers<[1], [0], [0], [1], [0, 0, 1, 1], [], []>} : vector<8x64xbf16>, vector<64x128xbf16>, vector<8x128xf32> -> vector<8x128xf32>
    %c0_14 = arith.constant 0 : index
    %c0_15 = arith.constant 0 : index
    %41 = vector.load %arg7[%c0_14, %c0_15] : memref<1x128xf32, #tpu.memory_space<vmem>>, vector<1x128xf32>
    %42 = vector.broadcast %41 : vector<1x128xf32> to vector<8x128xf32>
    %43 = arith.addf %40, %42 : vector<8x128xf32>
    %cst_16 = arith.constant 0.000000e+00 : f32
    %44 = vector.broadcast %cst_16 : f32 to vector<8x128xf32>
    %45 = arith.maximumf %43, %44 : vector<8x128xf32>
    %46 = arith.truncf %45 : vector<8x128xf32> to vector<8x128xbf16>
    %c0_17 = arith.constant 0 : index
    %c0_18 = arith.constant 0 : index
    %47 = vector.load %arg8[%c0_17, %c0_18] : memref<128x128xbf16, #tpu.memory_space<vmem>>, vector<128x128xbf16>
    %cst_19 = arith.constant dense<0.000000e+00> : vector<8x128xf32>
    %48 = tpu.matmul %46, %47, %cst_19 {dimension_numbers = #tpu.dot_dimension_numbers<[1], [0], [0], [1], [0, 0, 1, 1], [], []>} : vector<8x128xbf16>, vector<128x128xbf16>, vector<8x128xf32> -> vector<8x128xf32>
    %c0_20 = arith.constant 0 : index
    %c0_21 = arith.constant 0 : index
    %49 = vector.load %arg9[%c0_20, %c0_21] : memref<1x128xf32, #tpu.memory_space<vmem>>, vector<1x128xf32>
    %50 = vector.broadcast %49 : vector<1x128xf32> to vector<8x128xf32>
    %51 = arith.addf %48, %50 : vector<8x128xf32>
    %cst_22 = arith.constant 0.000000e+00 : f32
    %52 = vector.broadcast %cst_22 : f32 to vector<8x128xf32>
    %53 = arith.maximumf %51, %52 : vector<8x128xf32>
    %c0_23 = arith.constant 0 : index
    %c0_24 = arith.constant 0 : index
    %54 = vector.load %arg10[%c0_23, %c0_24] : memref<1x128xf32, #tpu.memory_space<vmem>>, vector<1x128xf32>
    %55 = vector.broadcast %54 : vector<1x128xf32> to vector<8x128xf32>
    %56 = arith.mulf %53, %55 : vector<8x128xf32>
    %cst_25 = arith.constant dense<0.000000e+00> : vector<8xf32>
    %57 = vector.multi_reduction <add>, %56, %cst_25 [1] : vector<8x128xf32> to vector<8xf32>
    %58 = vector.shape_cast %57 : vector<8xf32> to vector<8x1xf32>
    %c0_26 = arith.constant 0 : index
    %c0_27 = arith.constant 0 : index
    %59 = vector.load %arg11[%c0_26, %c0_27] : memref<1x1xf32, #tpu.memory_space<vmem>>, vector<1x1xf32>
    %60 = vector.broadcast %59 : vector<1x1xf32> to vector<8x1xf32>
    %61 = arith.addf %58, %60 : vector<8x1xf32>
    %62 = arith.negf %61 : vector<8x1xf32>
    %63 = math.exp %62 : vector<8x1xf32>
    %cst_28 = arith.constant 1.000000e+00 : f32
    %64 = vector.broadcast %cst_28 : f32 to vector<8x1xf32>
    %65 = arith.addf %64, %63 : vector<8x1xf32>
    %66 = arith.divf %64, %65 : vector<8x1xf32>
    %c0_29 = arith.constant 0 : index
    %c0_30 = arith.constant 0 : index
    %67 = vector.load %arg12[%c0_29, %c0_30] : memref<8x1xf32, #tpu.memory_space<vmem>>, vector<8x1xf32>
    tpu.vector_store %arg12[%c0_29, %c0_30], %66 {strides = array<i32>} : memref<8x1xf32, #tpu.memory_space<vmem>>, vector<8x1xf32>,
    return
  }
  func.func @transform_0(%arg0: i32) -> (i32, i32) {
    %c0_i32 = arith.constant 0 : i32
    %c0_i32_0 = arith.constant 0 : i32
    return %arg0, %c0_i32 : i32, i32
  }
  func.func @transform_1(%arg0: i32) -> (i32, i32) {
    %c0_i32 = arith.constant 0 : i32
    %c0_i32_0 = arith.constant 0 : i32
    %c0_i32_1 = arith.constant 0 : i32
    return %c0_i32, %c0_i32_0 : i32, i32
  }
  func.func @transform_2(%arg0: i32) -> (i32, i32) {
    %c0_i32 = arith.constant 0 : i32
    %c0_i32_0 = arith.constant 0 : i32
    %c0_i32_1 = arith.constant 0 : i32
    return %c0_i32, %c0_i32_0 : i32, i32
  }
  func.func @transform_3(%arg0: i32) -> (i32, i32) {
    %c0_i32 = arith.constant 0 : i32
    %c0_i32_0 = arith.constant 0 : i32
    %c0_i32_1 = arith.constant 0 : i32
    return %c0_i32, %c0_i32_0 : i32, i32
  }
  func.func @transform_4(%arg0: i32) -> (i32, i32) {
    %c0_i32 = arith.constant 0 : i32
    %c0_i32_0 = arith.constant 0 : i32
    %c0_i32_1 = arith.constant 0 : i32
    return %c0_i32, %c0_i32_0 : i32, i32
  }
  func.func @transform_5(%arg0: i32) -> (i32, i32) {
    %c0_i32 = arith.constant 0 : i32
    %c0_i32_0 = arith.constant 0 : i32
    %c0_i32_1 = arith.constant 0 : i32
    return %c0_i32, %c0_i32_0 : i32, i32
  }
  func.func @transform_6(%arg0: i32) -> (i32, i32) {
    %c0_i32 = arith.constant 0 : i32
    %c0_i32_0 = arith.constant 0 : i32
    %c0_i32_1 = arith.constant 0 : i32
    return %c0_i32, %c0_i32_0 : i32, i32
  }
  func.func @transform_7(%arg0: i32) -> (i32, i32) {
    %c0_i32 = arith.constant 0 : i32
    %c0_i32_0 = arith.constant 0 : i32
    %c0_i32_1 = arith.constant 0 : i32
    return %c0_i32, %c0_i32_0 : i32, i32
  }
  func.func @transform_8(%arg0: i32) -> (i32, i32) {
    %c0_i32 = arith.constant 0 : i32
    %c0_i32_0 = arith.constant 0 : i32
    %c0_i32_1 = arith.constant 0 : i32
    return %c0_i32, %c0_i32_0 : i32, i32
  }
  func.func @transform_9(%arg0: i32) -> (i32, i32) {
    %c0_i32 = arith.constant 0 : i32
    %c0_i32_0 = arith.constant 0 : i32
    %c0_i32_1 = arith.constant 0 : i32
    return %c0_i32, %c0_i32_0 : i32, i32
  }
  func.func @transform_10(%arg0: i32) -> (i32, i32) {
    %c0_i32 = arith.constant 0 : i32
    %c0_i32_0 = arith.constant 0 : i32
    %c0_i32_1 = arith.constant 0 : i32
    return %c0_i32, %c0_i32_0 : i32, i32
  }
  func.func @transform_11(%arg0: i32) -> (i32, i32) {
    %c0_i32 = arith.constant 0 : i32
    %c0_i32_0 = arith.constant 0 : i32
    return %arg0, %c0_i32 : i32, i32
  }
}

</mosaic_0001>

<bundles_post_ra>
// kernel: cnn_forward.1
= control target key start
LH: loop header
LB: loop body
LE: loop exit
PB: predicated region body
PF: predicated region fallthrough
CT: control target
= control target key end

     0   :  { %s733_s0 = inlined_call_operand.vmem [shape: f32[8,4], index: 0, kind: input, shape index: {}]   ;;  %s734_s1 = inlined_call_operand.vmem [shape: f32[4,32], index: 1, kind: input, shape index: {}]   ;;  %s735_s2 = inlined_call_operand.vmem [shape: f32[1,32], index: 2, kind: input, shape index: {}]   ;;  %s736_s3 = inlined_call_operand.hbm [shape: bf16[32,64], index: 3, kind: input, shape index: {}]   ;;  %s737_s4 = inlined_call_operand.vmem [shape: f32[1,64], index: 4, kind: input, shape index: {}]   ;;  %s738_s5 = inlined_call_operand.vmem [shape: bf16[64,128], index: 5, kind: input, shape index: {}]   ;;  %s739_s6 = inlined_call_operand.vmem [shape: f32[1,128], index: 6, kind: input, shape index: {}]   ;;  %s740_s7 = inlined_call_operand.hbm [shape: bf16[128,128], index: 7, kind: input, shape index: {}]   ;;  %s741_s8 = inlined_call_operand.vmem [shape: f32[1,128], index: 8, kind: input, shape index: {}]   ;;  %s742_s9 = inlined_call_operand.vmem [shape: f32[1,128], index: 9, kind: input, shape index: {}]   ;;  %s743_s10 = inlined_call_operand.<no memory space> [shape: f32[1,1], index: 10, kind: input, shape index: {}]   ;;  %s744_s11 = inlined_call_operand.vmem [shape: f32[8,1], index: 11, kind: output, shape index: {}]  }
   0x1   :  { %v16_v0 = vstv %s743_s10 }
   0x2   :  { %17 = vst [vmem:[#allocation2] sm:$0x1] %v16_v0 }
   0x3   :  { %18 = vsyncpa [#allocation4], 0 }
   0x4   :  { %19 = vsyncpa [#allocation6], 0  ;;  %s580_s19 = smov [#allocation3]   ;;  %s532_s23 = scalar_lea.hbm %s736_s3, 256 }
   0x5   :  { %s31_s20 = sshll.u32 %s580_s19, 4  ;;  %p533_p0 = scmp.ne.s32.totalorder %s736_s3, %s532_s23  ;;  %s32_s20 = int_to_ptr.vmem [resolvable:$true] %s31_s20 }
   0x6   :  { %p536_p1 = scmp.lt.u32.totalorder %s532_s23, %s736_s3 }
   0x8   :  { %p538_p2 = pnand %p536_p1, %p533_p0 }
   0xa   :  { %541 = shalt.err (!%p538_p2)
}
   0xb   :  { %s542_s10 = scalar_lea.vmem %s32_s20, 256  ;;  %p547_p4 = scmp.lt.s32.totalorder %s32_s20, %s32_s20 }
   0xc   :  { %p543_p3 = scmp.ne.s32.totalorder %s32_s20, %s542_s10  ;;  %p548_p5 = scmp.lt.s32.totalorder %s542_s10, %s542_s10 }
   0xe   :  { %p549_p6 = por %p548_p5, %p547_p4 }
  0x10   :  { %p550_p7 = pnand %p549_p6, %p543_p3 }
  0x12   :  { %553 = shalt.err (!%p550_p7)
}
  0x13   :  { %s581_s28 = smov 64   ;;  %s582_s29 = smov 4  }
  0x14   :  { %37 = dma.hbm_to_vmem [thread:$0]  %s736_s3, 256, %s32_s20, [#allocation4], %s581_s28, %s581_s28, %s582_s29  }
  0x15   :  { %s583_s13 = smov [#allocation5]   ;;  %s554_s17 = scalar_lea.hbm %s740_s7, 1024 }
  0x16   :  { %s49_s14 = sshll.u32 %s583_s13, 4  ;;  %p555_p8 = scmp.ne.s32.totalorder %s740_s7, %s554_s17  ;;  %s50_s14 = int_to_ptr.vmem [resolvable:$true] %s49_s14 }
  0x17   :  { %p558_p9 = scmp.lt.u32.totalorder %s554_s17, %s740_s7 }
  0x19   :  { %p560_p10 = pnand %p558_p9, %p555_p8 }
  0x1b   :  { %563 = shalt.err (!%p560_p10)
}
  0x1c   :  { %s564_s23 = scalar_lea.vmem %s50_s14, 1024  ;;  %p569_p12 = scmp.lt.s32.totalorder %s50_s14, %s50_s14 }
  0x1d   :  { %p565_p11 = scmp.ne.s32.totalorder %s50_s14, %s564_s23  ;;  %p570_p13 = scmp.lt.s32.totalorder %s564_s23, %s564_s23 }
  0x1f   :  { %p571_p0 = por %p570_p13, %p569_p12 }
  0x21   :  { %p572_p1 = pnand %p571_p0, %p565_p11 }
  0x23   :  { %575 = shalt.err (!%p572_p1)
}
  0x24   :  { %55 = dma.hbm_to_vmem [thread:$0]  %s740_s7, 1024, %s50_s14, [#allocation6], %s581_s28, %s581_s28, %s582_s29  }
  0x25   :  { %576 = dma.done.wait [#allocation4], 256  }
  0x26   :  { %577 = vsyncadd [#allocation4], 4294967040 }
  0x27   :  { %578 = dma.done.wait [#allocation6], 1024  }
  0x28   :  { %579 = vsyncadd [#allocation6], 4294966272  ;;  %v584_v1 = vmov 0   ;;  %v585_v2 = vmov 2   ;;  %v69_v3 = vld [vmem:[%s733_s0] sm:$0xff]  ;;  %v586_v4 = vmov 1   ;;  %v76_v9 = vlaneseq }
  0x29   :  { %509 = vset.pattern.permute.xlu0 %v584_v1  ;;  %511 = vset.pattern.permute.xlu1 %v585_v2  ;;  %v587_v5 = vmov 3   ;;  %v514_v6 = vld [vmem:[#allocation3] sm:$0xff]   ;;  %v588_v7 = vmov 0.0   ;;  %v515_v8 = vld [vmem:[#allocation3 + $0x8] sm:$0xff]   ;;  %vm589_vm0 = vmmov 0   ;;  %vm144_vm1 = vcmask 261120  }
  0x2a   :  { %73 = vperm.xlu0 %509, %v69_v3   ;;  %92 = vperm.xlu1 %511, %v69_v3   ;;  %v77_v10 = vshrl.u32 %v76_v9, 7  ;;  %v70_v13 = vld [vmem:[%s734_s1] sm:$0xf]  ;;  %v517_v36 = vld [vmem:[%s738_s5 + $0x8] sm:$0xff]   ;;  %v518_v37 = vld [vmem:[%s738_s5 + $0x10] sm:$0xff]   ;;  %vm229_vm2 = vcmask 523264  }
  0x2b   :  { %459 = vmatprep.subr.bf16.mxu1 %v588_v7  ;;  %479 = vmatprep.subr.bf16.mxu0 %v588_v7  ;;  %v419_v30 = vld [vmem:[%s735_s2] ss:$0 sm:$0xff]  ;;  %v519_v38 = vld [vmem:[%s738_s5 + $0x18] sm:$0xff]   ;;  %v522_v41 = vld [vmem:[#allocation5 + $0x10] sm:$0xff]   ;;  %vm411_vm3 = vcmask 7168  }
  0x2c   :  { %460 = vmatpush3.bf16.msra.mxu1 %v514_v6  ;;  %463 = vmatprep.mubr.msk.bf16.mxu1 %vm589_vm0, %v588_v7  ;;  %v78_v11 = vsub.s32 0, %v77_v10  ;;  %v87_v12 = vsub.s32 1, %v77_v10  ;;  %v97_v15 = vsub.s32 2, %v77_v10  ;;  %v107_v17 = vsub.s32 3, %v77_v10  ;;  %v516_v34 = vld [vmem:[%s738_s5] sm:$0xff]   ;;  %v520_v39 = vld [vmem:[#allocation5] sm:$0xff]  }
  0x2d   :  { %461 = vmatprep.subr.bf16.mxu1 %v588_v7  ;;  %495 = vmatprep.mubr.msk.bf16.mxu0 %vm589_vm0, %v588_v7  ;;  %v521_v40 = vld [vmem:[#allocation5 + $0x8] sm:$0xff]   ;;  %v523_v42 = vld [vmem:[#allocation5 + $0x18] sm:$0xff]   ;;  %v524_v43 = vld [vmem:[#allocation5 + $0x20] sm:$0xff]  }
  0x2e   :  { %510 = vset.pattern.permute.xlu0 %v586_v4  ;;  %512 = vset.pattern.permute.xlu1 %v587_v5  ;;  %v79_v18 = vrot.slane %v70_v13, %v78_v11  ;;  %v88_v19 = vrot.slane %v70_v13, %v87_v12  ;;  %v98_v20 = vrot.slane %v70_v13, %v97_v15  ;;  %v525_v44 = vld [vmem:[#allocation5 + $0x28] sm:$0xff]   ;;  %v526_v53 = vld [vmem:[#allocation5 + $0x30] sm:$0xff]   ;;  %v527_v54 = vld [vmem:[#allocation5 + $0x38] sm:$0xff]  }
  0x2f   :  { %82 = vperm.xlu0 %510, %v69_v3   ;;  %102 = vperm.xlu1 %512, %v69_v3   ;;  %v108_v21 = vrot.slane %v70_v13, %v107_v17  ;;  %v420_v45 = vld [vmem:[%s737_s4] ss:$0 sm:$0xff] }
  0x30   :  { %462 = vmatpush3.bf16.msra.mxu1 %v515_v8  ;;  %480 = vmatpush3.bf16.msra.mxu0 %v520_v39  ;;  %v424_v55 = vld [vmem:[%s739_s6] ss:$0 sm:$0xff] }
  0x31   :  { %467 = vmatprep.subr.bf16.mxu1 %v588_v7  ;;  %481 = vmatprep.subr.bf16.mxu0 %v588_v7  ;;  %v430_v63 = vld [vmem:[%s741_s8] ss:$0 sm:$0xff] }
  0x32   :  { %v439_v4 = vld [vmem:[%s742_s9] ss:$0 sm:$0xff] }
  0x33   :  { %513 = vset.pattern.permute.xlu0 %v587_v5  ;;  %v440_v8 = vld [vmem:[#allocation2] ss:$0 sm:$0xff] }
  0x34   :  { %482 = vmatpush3.bf16.msra.mxu0 %v521_v40 }
  0x35   :  { %483 = vmatprep.subr.bf16.mxu0 %v588_v7 }
  0x38   :  { %484 = vmatpush3.bf16.msra.mxu0 %v522_v41 }
  0x39   :  { %485 = vmatprep.subr.bf16.mxu0 %v588_v7 }
  0x3c   :  { %486 = vmatpush3.bf16.msra.mxu0 %v523_v42 }
  0x3d   :  { %487 = vmatprep.subr.bf16.mxu0 %v588_v7 }
  0x40   :  { %488 = vmatpush3.bf16.msra.mxu0 %v524_v43 }
  0x41   :  { %489 = vmatprep.subr.bf16.mxu0 %v588_v7 }
  0x44   :  { %490 = vmatpush3.bf16.msra.mxu0 %v525_v44 }
  0x45   :  { %491 = vmatprep.subr.bf16.mxu0 %v588_v7 }
  0x48   :  { %492 = vmatpush3.bf16.msra.mxu0 %v526_v53 }
  0x49   :  { %493 = vmatprep.subr.bf16.mxu0 %v588_v7 }
  0x4c   :  { %494 = vmatpush3.bf16.msra.mxu0 %v527_v54 }
  0xa9   :  { %v74_v14 = vpop.permute.xlu0 %73  ;;  %v93_v16 = vpop.permute.xlu1 %92 }
  0xaa   :  { %v80_v24 = vmul.f32 %v79_v18, %v74_v14  ;;  %v99_v26 = vmul.f32 %v98_v20, %v93_v16 }
  0xae   :  { %v83_v22 = vpop.permute.xlu0 %82  ;;  %v103_v23 = vpop.permute.xlu1 %102 }
  0xaf   :  { %v89_v25 = vmul.f32 %v88_v19, %v83_v22  ;;  %v109_v28 = vmul.f32 %v108_v21, %v103_v23 }
  0xb1   :  { %v90_v27 = vadd.f32 %v89_v25, %v80_v24 }
  0xb3   :  { %v100_v29 = vadd.f32 %v99_v26, %v90_v27 }
  0xb5   :  { %v110_v31 = vadd.f32 %v109_v28, %v100_v29 }
  0xb7   :  { %v118_v32 = vadd.f32 %v419_v30, %v110_v31 }
  0xb9   :  { %v119_v33 = vmax.f32 %v118_v32, 0.0 }
  0xbb   :  { %v120_v35 = vpack.c.bf16 %v119_v33, %v119_v33 }
  0xbd   :  { %464 = vmatmul.mubr.msk.bf16.vlgmr.msra.gmra.mrb[0].mxu1 %vm144_vm1, %v120_v35 }
  0xbe   :  { %468 = vmatpush3.bf16.msra.mxu1 %v516_v34  ;;  %475 = vmatprep.mubr.msk.bf16.mxu1 %vm589_vm0, %v588_v7 }
  0xbf   :  { %469 = vmatprep.subr.bf16.mxu1 %v588_v7 }
  0xc2   :  { %470 = vmatpush3.bf16.msra.mxu1 %v517_v36 }
  0xc3   :  { %471 = vmatprep.subr.bf16.mxu1 %v588_v7 }
  0xc6   :  { %472 = vmatpush3.bf16.msra.mxu1 %v518_v37 }
  0xc7   :  { %473 = vmatprep.subr.bf16.mxu1 %v588_v7 }
  0xca   :  { %474 = vmatpush3.bf16.msra.mxu1 %v519_v38 }
 0x190   :  { %v182_v46 = vpop.f32.mrb[0].mxu1 }
 0x191   :  { %v183_v47 = vadd.f32 %v420_v45, %v182_v46  ;;  %v465_v48 = vpop.f32.mrb[1].mxu1 }
 0x192   :  { %v185_v49 = vpop.f32.mrb[2].mxu1 }
 0x193   :  { %v188_v50 = vmax.f32 %v183_v47, 0.0  ;;  %v466_v51 = vpop.f32.mrb[3].mxu1 }
 0x195   :  { %v189_v52 = vpack.c.bf16 %v188_v50, %v188_v50 }
 0x197   :  { %476 = vmatmul.mubr.msk.bf16.vlgmr.msra.gmra.mrb[4].mxu1 %vm229_vm2, %v189_v52 }
 0x26a   :  { %v267_v56 = vpop.f32.mrb[4].mxu1 }
 0x26b   :  { %v268_v57 = vadd.f32 %v424_v55, %v267_v56  ;;  %v477_v58 = vpop.f32.mrb[5].mxu1 }
 0x26c   :  { %v270_v59 = vpop.f32.mrb[6].mxu1 }
 0x26d   :  { %v273_v60 = vmax.f32 %v268_v57, 0.0  ;;  %v478_v61 = vpop.f32.mrb[7].mxu1 }
 0x26f   :  { %v274_v62 = vpack.c.bf16 %v273_v60, %v273_v60 }
 0x271   :  { %496 = vmatmul.mubr.bf16.vlgmr.msra.gmra.mrb[0].mxu0 %v274_v62 }
 0x344   :  { %v380_v0 = vpop.f32.mrb[0].mxu0 }
 0x345   :  { %v381_v1 = vadd.f32 %v430_v63, %v380_v0  ;;  %v497_v2 = vpop.f32.mrb[1].mxu0 }
 0x346   :  { %v383_v3 = vpop.f32.mrb[2].mxu0 }
 0x347   :  { %v386_v5 = vmax.f32 %v381_v1, 0.0  ;;  %v498_v6 = vpop.f32.mrb[3].mxu0 }
 0x349   :  { %v394_v7 = vmul.f32 %v439_v4, %v386_v5 }
 0x34b   :  { %395 = vadd.xlane.f32.xlu1 %v394_v7 }
 0x3d8   :  { %v396_v9 = vpop.xlane.xlu1 %395 }
 0x3d9   :  { %v404_v10 = vadd.f32 %v440_v8, %v396_v9 }
 0x3db   :  { %v441_v11 = vmul.f32 -1.442695, %v404_v10 }
 0x3dd   :  { %528 = vpow2.f32 %v441_v11 }
 0x3e7   :  { %v529_v12 = vpop.eup %528 }
 0x3e8   :  { %v408_v13 = vadd.f32 1.0, %v529_v12 }
 0x3ea   :  { %530 = vrcp.f32 %v408_v13 }
 0x3f4   :  { %v531_v14 = vpop.eup %530 }
 0x3f5   :  { %412 = vst.msk [vmem:[%s744_s11] sm:$0xff] %vm411_vm3, %v531_v14 }
 0x3f6   :  { %417 = vsyncpa [#allocation4], 1 }
 0x3f7   :  { %418 = vsyncpa [#allocation6], 1 }

</bundles_post_ra>
